<compile_context>
chip_gen: v6e
topology: v6e:2x2x1
jax: 0.10.0
libtpu: 0.0.40
codegen_flags: <defaults>
</compile_context>

<pallas_src>
import functools

import jax
import jax.numpy as jnp
from jax.experimental import pallas as pl
from jax.experimental.pallas import tpu as pltpu

_LANE = 128
_SUBLANE = 8
_FUSED_WEIGHT_BYTES_MAX = 4 * 2 ** 20   # keep all layer weights resident below this


def _round_up(a, b):
    return (a + b - 1) // b * b


def _vmem_budget_bytes():
    """Usable VMEM budget: physical capacity minus ~25% headroom for the compiler."""
    cap = None
    try:
        cap = getattr(pltpu.get_tpu_info(), "vmem_capacity_bytes", None)
    except Exception:
        cap = None
    if not cap:
        cap = 64 * 2 ** 20                # conservative fallback (v7x-sized)
    return int(cap) * 3 // 4              # ~48 MiB on v7x, ~96 MiB on v5e/v6e


def _default_tm_target():
    try:
        kind = jax.devices()[0].device_kind.lower()
    except Exception:
        kind = ""
    if "v5e" in kind or "v5 lite" in kind or "v5litepod" in kind:
        return 384    # v5e balance point (~240 FLOPs/byte): 256-384 rows is enough
    return 512        # v6e/v7x: bigger row tiles amortize the per-layer weight stream


def _linear_ln_relu(h_bf16, wt_bf16, bias, gamma, beta, *, inv_d, eps, n_pad):
    """One Linear -> LayerNorm -> ReLU step; returns the bf16 hidden state."""
    # Linear: bf16 x bf16 operands, f32 accumulation on the MXU.
    z = jnp.dot(h_bf16, wt_bf16, preferred_element_type=jnp.float32) + bias
    # Two-pass LayerNorm (numerically stable).  Padded feature lanes of z are
    # exactly 0; mask them out of the variance so statistics use the real D.
    mu = jnp.sum(z, axis=-1, keepdims=True) * inv_d
    zc = z - mu
    if n_pad > 0:
        lane = jax.lax.broadcasted_iota(jnp.int32, z.shape, z.ndim - 1)
        zc = jnp.where(lane < (z.shape[-1] - n_pad), zc, 0.0)
    var = jnp.sum(zc * zc, axis=-1, keepdims=True) * inv_d
    zn = zc * jax.lax.rsqrt(var + eps)
    zn = zn * gamma + beta                 # padded lanes: gamma == beta == 0 -> stay 0
    return jnp.maximum(zn, 0.0).astype(jnp.bfloat16)


def _res_mlp_stream_kernel(x_ref, wt_ref, p_ref, o_ref, h_ref, *, inv_d, eps, n_pad):
    # One grid step = one hidden layer applied to one row tile.
    #   x_ref : (tm, Dp)      input rows (block index invariant over the layer axis)
    #   wt_ref: (1, Dp, Dp)   this layer's pre-transposed bf16 W^T
    #   p_ref : (1, 3, Dp)    packed f32 [bias, gamma, beta]
    #   o_ref : (tm, Dp)      output rows
    #   h_ref : (tm, Dp)      bf16 VMEM scratch carrying the hidden state across layers
    layer = pl.program_id(1)

    @pl.when(layer == 0)
    def _():
        h_ref[...] = x_ref[...].astype(jnp.bfloat16)

    p = p_ref[...]
    h_ref[...] = _linear_ln_relu(
        h_ref[...], wt_ref[0], p[0, 0:1, :], p[0, 1:2, :], p[0, 2:3, :],
        inv_d=inv_d, eps=eps, n_pad=n_pad)

    @pl.when(layer == pl.num_programs(1) - 1)
    def _():
        o_ref[...] = (x_ref[...].astype(jnp.float32)
                      + h_ref[...].astype(jnp.float32)).astype(o_ref.dtype)


def _res_mlp_fused_kernel(x_ref, wt_ref, p_ref, o_ref, *, num_layers, inv_d, eps, n_pad):
    # All layer weights resident; one grid step = one row tile through every layer.
    #   x_ref : (tm, Dp)       wt_ref: (L, Dp, Dp)     p_ref: (L, 3, Dp)
    x = x_ref[...]
    p = p_ref[...]
    h = x.astype(jnp.bfloat16)
    for l in range(num_layers):            # static unroll; L is small on this path
        h = _linear_ln_relu(
            h, wt_ref[l], p[l, 0:1, :], p[l, 1:2, :], p[l, 2:3, :],
            inv_d=inv_d, eps=eps, n_pad=n_pad)
    o_ref[...] = (x.astype(jnp.float32) + h.astype(jnp.float32)).astype(o_ref.dtype)


def prepare_residual_mlp_params(w, b, gamma, beta):
    """One-time parameter prep (hoisted out of the hot path; cache in the caller).

    w: (L, D, D) PyTorch-style (out, in);  b/gamma/beta: (L, D).
    Returns (wt, params): lane-padded bf16 W^T of shape (L, Dp, Dp) and packed
    f32 [bias, gamma, beta] of shape (L, 3, Dp).
    """
    L, Do, Di = w.shape
    assert Do == Di, "ResidualMLPBlock requires input_dim == hidden_dim == output_dim"
    D = Do
    Dp = _round_up(D, _LANE)
    wt = jnp.transpose(w, (0, 2, 1)).astype(jnp.bfloat16)
    wt = jnp.pad(wt, ((0, 0), (0, Dp - D), (0, Dp - D)))
    params = jnp.stack([b, gamma, beta], axis=1).astype(jnp.float32)   # (L, 3, D)
    params = jnp.pad(params, ((0, 0), (0, 0), (0, Dp - D)))
    return wt, params


def residual_mlp_block(x, wt, params, *, eps=1e-5, tm_target=None, force_stream=False):
    """x: (B, S, D); wt/params from prepare_residual_mlp_params."""
    B, S, D = x.shape
    L = params.shape[0]
    Dp = params.shape[2]
    assert wt.shape == (L, Dp, Dp)
    n_pad = Dp - D
    M = B * S
    x_isz = jnp.dtype(x.dtype).itemsize
    out_isz = x_isz

    if tm_target is None:
        tm_target = _default_tm_target()
    budget = _vmem_budget_bytes()

    w_bytes_all = L * Dp * Dp * 2
    fused = (not force_stream) and (w_bytes_all <= _FUSED_WEIGHT_BYTES_MAX)

    if fused:
        fixed = 2 * (w_bytes_all + L * 3 * Dp * 4)       # resident weights + params
        per_row = Dp * (2 * x_isz + 2 * out_isz)          # x + out tiles (double-buffered)
    else:
        fixed = 2 * (Dp * Dp * 2 + 3 * Dp * 4)            # one layer's W^T (double-buffered)
        per_row = Dp * (2 * x_isz + 2 * out_isz + 2)      # + bf16 hidden-state carry

    avail = max(budget - fixed, _SUBLANE * per_row)
    tm_cap = max(_SUBLANE, (avail // per_row) // _SUBLANE * _SUBLANE)

    tm = min(tm_target, tm_cap, _round_up(M, _SUBLANE))
    if M > _SUBLANE:
        # Guarantee >= 2 row tiles so both v7x TensorCores get work on the parallel axis.
        tm = min(tm, _round_up((M + 1) // 2, _SUBLANE))
    tm = max(_SUBLANE, tm // _SUBLANE * _SUBLANE)
    Mp = _round_up(M, tm)
    n_row_tiles = Mp // tm

    x2 = jnp.pad(x.reshape(M, D), ((0, Mp - M), (0, n_pad)))

    vmem_est = fixed + per_row * tm
    vmem_limit = int(min(budget, max(32 * 2 ** 20, 2 * vmem_est)))

    cost = pl.CostEstimate(
        flops=2 * Mp * L * Dp * Dp,
        transcendentals=Mp * L,                           # one rsqrt per row per layer
        bytes_accessed=(w_bytes_all * n_row_tiles
                        + Mp * Dp * (x_isz + out_isz)
                        + L * 3 * Dp * 4 * n_row_tiles),
    )

    if fused:
        kernel = functools.partial(_res_mlp_fused_kernel, num_layers=L,
                                   inv_d=1.0 / D, eps=eps, n_pad=n_pad)
        out = pl.pallas_call(
            kernel,
            out_shape=jax.ShapeDtypeStruct((Mp, Dp), x.dtype),
            grid_spec=pltpu.PrefetchScalarGridSpec(
                num_scalar_prefetch=0,
                grid=(n_row_tiles,),
                in_specs=[
                    pl.BlockSpec((tm, Dp), lambda i: (i, 0)),          # x rows
                    pl.BlockSpec((L, Dp, Dp), lambda i: (0, 0, 0)),    # all weights resident
                    pl.BlockSpec((L, 3, Dp), lambda i: (0, 0, 0)),     # packed bias/gamma/beta
                ],
                out_specs=pl.BlockSpec((tm, Dp), lambda i: (i, 0)),
            ),
            compiler_params=pltpu.CompilerParams(
                dimension_semantics=("parallel",),
                vmem_limit_bytes=vmem_limit,
            ),
            cost_estimate=cost,
        )(x2, wt, params)
    else:
        kernel = functools.partial(_res_mlp_stream_kernel,
                                   inv_d=1.0 / D, eps=eps, n_pad=n_pad)
        out = pl.pallas_call(
            kernel,
            out_shape=jax.ShapeDtypeStruct((Mp, Dp), x.dtype),
            grid_spec=pltpu.PrefetchScalarGridSpec(
                num_scalar_prefetch=0,
                grid=(n_row_tiles, L),                                  # layer (carry) axis last
                in_specs=[
                    pl.BlockSpec((tm, Dp), lambda i, l: (i, 0)),        # x rows (invariant over l)
                    pl.BlockSpec((1, Dp, Dp), lambda i, l: (l, 0, 0)),  # stream one layer's W^T
                    pl.BlockSpec((1, 3, Dp), lambda i, l: (l, 0, 0)),   # packed bias/gamma/beta
                ],
                out_specs=pl.BlockSpec((tm, Dp), lambda i, l: (i, 0)),
                scratch_shapes=[pltpu.VMEM((tm, Dp), jnp.bfloat16)],    # hidden-state carry
            ),
            compiler_params=pltpu.CompilerParams(
                dimension_semantics=("parallel", "arbitrary"),
                vmem_limit_bytes=vmem_limit,
            ),
            cost_estimate=cost,
        )(x2, wt, params)

    return out[:M, :D].reshape(B, S, D)


def _reference(x, w, b, gamma, beta, eps=1e-5):
    # Pure-JAX reference mirroring the kernel's precision choices
    # (bf16 matmul operands and bf16 hidden-state carry, f32 epilogue).
    x0 = x.astype(jnp.float32)
    h = x.astype(jnp.bfloat16)
    for l in range(w.shape[0]):
        wl = w[l].astype(jnp.bfloat16).astype(jnp.float32)
        z = h.astype(jnp.float32) @ wl.T + b[l].astype(jnp.float32)
        mu = jnp.mean(z, axis=-1, keepdims=True)
        var = jnp.mean((z - mu) ** 2, axis=-1, keepdims=True)
        z = (z - mu) / jnp.sqrt(var + eps)
        z = z * gamma[l].astype(jnp.float32) + beta[l].astype(jnp.float32)
        h = jnp.maximum(z, 0.0).astype(jnp.bfloat16)
    return (x0 + h.astype(jnp.float32)).astype(x.dtype)


if __name__ == "__main__":
    # Small shapes: input_dim == hidden_dim == output_dim == 32, 2 hidden layers
    B, S, D, L = 2, 8, 32, 2

    key = jax.random.PRNGKey(0)
    kx, kw, kb = jax.random.split(key, 3)

    x = jax.random.normal(kx, (B, S, D), dtype=jnp.float32)

    # Deterministic parameter init (PyTorch-Linear-like uniform bound 1/sqrt(D))
    bound = 1.0 / (D ** 0.5)
    w = jax.random.uniform(kw, (L, D, D), jnp.float32, -bound, bound)   # (out, in)
    b = jax.random.uniform(kb, (L, D), jnp.float32, -bound, bound)
    gamma = jnp.ones((L, D), jnp.float32)    # LayerNorm default weight
    beta = jnp.zeros((L, D), jnp.float32)    # LayerNorm default bias

    wt, params = prepare_residual_mlp_params(w, b, gamma, beta)   # hoisted one-time prep
    ref = _reference(x, w, b, gamma, beta)

    # Fused small-problem path (default for this size).
    out = jax.block_until_ready(residual_mlp_block(x, wt, params))
    assert out.shape == (B, S, D)
    assert jnp.allclose(out, ref, atol=2e-3, rtol=2e-3), "mismatch vs reference (fused path)"

    # Streamed per-layer path (exercised explicitly to validate the large-D path).
    out_s = jax.block_until_ready(residual_mlp_block(x, wt, params, force_stream=True))
    assert jnp.allclose(out_s, ref, atol=2e-3, rtol=2e-3), "mismatch vs reference (streamed path)"

    print("KERNEL_OK")
</pallas_src>

<mosaic_0001>
module attributes {stable_mosaic.version = 11 : i64} {
  func.func @_res_mlp_fused_kernel(%arg0: i32, %arg1: memref<8x128xf32, #tpu.memory_space<vmem>>, %arg2: memref<2x128x128xbf16, #tpu.memory_space<vmem>>, %arg3: memref<2x3x128xf32, #tpu.memory_space<vmem>>, %arg4: memref<8x128xf32, #tpu.memory_space<vmem>>) attributes {dimension_semantics = [#tpu.dimension_semantics<parallel>], iteration_bounds = array<i64: 2>, scalar_prefetch = 0 : i64, scratch_operands = 0 : i64, tpu.core_type = #tpu.core_type<tc>, window_params = [{transform_indices = @transform_0, window_bounds = array<i64: 8, 128>}, {pipeline_mode = #tpu.pipeline_mode<synchronous>, transform_indices = @transform_1, window_bounds = array<i64: 2, 128, 128>}, {pipeline_mode = #tpu.pipeline_mode<synchronous>, transform_indices = @transform_2, window_bounds = array<i64: 2, 3, 128>}, {transform_indices = @transform_3, window_bounds = array<i64: 8, 128>}]} {
    %c0 = arith.constant 0 : index
    %c0_0 = arith.constant 0 : index
    %0 = vector.load %arg1[%c0, %c0_0] : memref<8x128xf32, #tpu.memory_space<vmem>>, vector<8x128xf32>
    %c0_1 = arith.constant 0 : index
    %c0_2 = arith.constant 0 : index
    %c0_3 = arith.constant 0 : index
    %1 = vector.load %arg3[%c0_1, %c0_2, %c0_3] : memref<2x3x128xf32, #tpu.memory_space<vmem>>, vector<2x3x128xf32>
    %2 = arith.truncf %0 : vector<8x128xf32> to vector<8x128xbf16>
    %c0_4 = arith.constant 0 : index
    %c0_5 = arith.constant 0 : index
    %c0_6 = arith.constant 0 : index
    %3 = vector.load %arg2[%c0_4, %c0_5, %c0_6] : memref<2x128x128xbf16, #tpu.memory_space<vmem>>, vector<1x128x128xbf16>
    %4 = vector.shape_cast %3 : vector<1x128x128xbf16> to vector<128x128xbf16>
    %5 = vector.extract_strided_slice %1 {offsets = [0, 0, 0], sizes = [1, 1, 128], strides = [1, 1, 1]} : vector<2x3x128xf32> to vector<1x1x128xf32>
    %6 = vector.shape_cast %5 : vector<1x1x128xf32> to vector<1x128xf32>
    %7 = vector.extract_strided_slice %1 {offsets = [0, 1, 0], sizes = [1, 1, 128], strides = [1, 1, 1]} : vector<2x3x128xf32> to vector<1x1x128xf32>
    %8 = vector.shape_cast %7 : vector<1x1x128xf32> to vector<1x128xf32>
    %9 = vector.extract_strided_slice %1 {offsets = [0, 2, 0], sizes = [1, 1, 128], strides = [1, 1, 1]} : vector<2x3x128xf32> to vector<1x1x128xf32>
    %10 = vector.shape_cast %9 : vector<1x1x128xf32> to vector<1x128xf32>
    %cst = arith.constant dense<0.000000e+00> : vector<8x128xf32>
    %11 = tpu.matmul %2, %4, %cst {dimension_numbers = #tpu.dot_dimension_numbers<[1], [0], [0], [1], [0, 0, 1, 1], [], []>} : vector<8x128xbf16>, vector<128x128xbf16>, vector<8x128xf32> -> vector<8x128xf32>
    %12 = vector.broadcast %6 : vector<1x128xf32> to vector<8x128xf32>
    %13 = arith.addf %11, %12 : vector<8x128xf32>
    %cst_7 = arith.constant dense<0.000000e+00> : vector<8xf32>
    %14 = vector.multi_reduction <add>, %13, %cst_7 [1] : vector<8x128xf32> to vector<8xf32>
    %15 = vector.shape_cast %14 : vector<8xf32> to vector<8x1xf32>
    %cst_8 = arith.constant 3.125000e-02 : f32
    %16 = vector.broadcast %cst_8 : f32 to vector<8x1xf32>
    %17 = arith.mulf %15, %16 : vector<8x1xf32>
    %18 = vector.broadcast %17 : vector<8x1xf32> to vector<8x128xf32>
    %19 = arith.subf %13, %18 : vector<8x128xf32>
    %20 = tpu.iota {dimensions = array<i32: 1>} : vector<8x128xi32>
    %c32_i32 = arith.constant 32 : i32
    %21 = vector.broadcast %c32_i32 : i32 to vector<8x128xi32>
    %22 = arith.cmpi slt, %20, %21 : vector<8x128xi32>
    %cst_9 = arith.constant 0.000000e+00 : f32
    %23 = vector.broadcast %cst_9 : f32 to vector<8x128xf32>
    %24 = arith.select %22, %19, %23 : vector<8x128xi1>, vector<8x128xf32>
    %25 = arith.mulf %24, %24 : vector<8x128xf32>
    %cst_10 = arith.constant dense<0.000000e+00> : vector<8xf32>
    %26 = vector.multi_reduction <add>, %25, %cst_10 [1] : vector<8x128xf32> to vector<8xf32>
    %27 = vector.shape_cast %26 : vector<8xf32> to vector<8x1xf32>
    %cst_11 = arith.constant 3.125000e-02 : f32
    %28 = vector.broadcast %cst_11 : f32 to vector<8x1xf32>
    %29 = arith.mulf %27, %28 : vector<8x1xf32>
    %cst_12 = arith.constant 9.99999974E-6 : f32
    %30 = vector.broadcast %cst_12 : f32 to vector<8x1xf32>
    %31 = arith.addf %29, %30 : vector<8x1xf32>
    %32 = math.rsqrt %31 : vector<8x1xf32>
    %33 = vector.broadcast %32 : vector<8x1xf32> to vector<8x128xf32>
    %34 = arith.mulf %24, %33 : vector<8x128xf32>
    %35 = vector.broadcast %8 : vector<1x128xf32> to vector<8x128xf32>
    %36 = arith.mulf %34, %35 : vector<8x128xf32>
    %37 = vector.broadcast %10 : vector<1x128xf32> to vector<8x128xf32>
    %38 = arith.addf %36, %37 : vector<8x128xf32>
    %cst_13 = arith.constant 0.000000e+00 : f32
    %39 = vector.broadcast %cst_13 : f32 to vector<8x128xf32>
    %40 = arith.maximumf %38, %39 : vector<8x128xf32>
    %41 = arith.truncf %40 : vector<8x128xf32> to vector<8x128xbf16>
    %c1 = arith.constant 1 : index
    %c0_14 = arith.constant 0 : index
    %c0_15 = arith.constant 0 : index
    %42 = vector.load %arg2[%c1, %c0_14, %c0_15] : memref<2x128x128xbf16, #tpu.memory_space<vmem>>, vector<1x128x128xbf16>
    %43 = vector.shape_cast %42 : vector<1x128x128xbf16> to vector<128x128xbf16>
    %44 = vector.extract_strided_slice %1 {offsets = [1, 0, 0], sizes = [1, 1, 128], strides = [1, 1, 1]} : vector<2x3x128xf32> to vector<1x1x128xf32>
    %45 = vector.shape_cast %44 : vector<1x1x128xf32> to vector<1x128xf32>
    %46 = vector.extract_strided_slice %1 {offsets = [1, 1, 0], sizes = [1, 1, 128], strides = [1, 1, 1]} : vector<2x3x128xf32> to vector<1x1x128xf32>
    %47 = vector.shape_cast %46 : vector<1x1x128xf32> to vector<1x128xf32>
    %48 = vector.extract_strided_slice %1 {offsets = [1, 2, 0], sizes = [1, 1, 128], strides = [1, 1, 1]} : vector<2x3x128xf32> to vector<1x1x128xf32>
    %49 = vector.shape_cast %48 : vector<1x1x128xf32> to vector<1x128xf32>
    %cst_16 = arith.constant dense<0.000000e+00> : vector<8x128xf32>
    %50 = tpu.matmul %41, %43, %cst_16 {dimension_numbers = #tpu.dot_dimension_numbers<[1], [0], [0], [1], [0, 0, 1, 1], [], []>} : vector<8x128xbf16>, vector<128x128xbf16>, vector<8x128xf32> -> vector<8x128xf32>
    %51 = vector.broadcast %45 : vector<1x128xf32> to vector<8x128xf32>
    %52 = arith.addf %50, %51 : vector<8x128xf32>
    %cst_17 = arith.constant dense<0.000000e+00> : vector<8xf32>
    %53 = vector.multi_reduction <add>, %52, %cst_17 [1] : vector<8x128xf32> to vector<8xf32>
    %54 = vector.shape_cast %53 : vector<8xf32> to vector<8x1xf32>
    %cst_18 = arith.constant 3.125000e-02 : f32
    %55 = vector.broadcast %cst_18 : f32 to vector<8x1xf32>
    %56 = arith.mulf %54, %55 : vector<8x1xf32>
    %57 = vector.broadcast %56 : vector<8x1xf32> to vector<8x128xf32>
    %58 = arith.subf %52, %57 : vector<8x128xf32>
    %59 = tpu.iota {dimensions = array<i32: 1>} : vector<8x128xi32>
    %c32_i32_19 = arith.constant 32 : i32
    %60 = vector.broadcast %c32_i32_19 : i32 to vector<8x128xi32>
    %61 = arith.cmpi slt, %59, %60 : vector<8x128xi32>
    %cst_20 = arith.constant 0.000000e+00 : f32
    %62 = vector.broadcast %cst_20 : f32 to vector<8x128xf32>
    %63 = arith.select %61, %58, %62 : vector<8x128xi1>, vector<8x128xf32>
    %64 = arith.mulf %63, %63 : vector<8x128xf32>
    %cst_21 = arith.constant dense<0.000000e+00> : vector<8xf32>
    %65 = vector.multi_reduction <add>, %64, %cst_21 [1] : vector<8x128xf32> to vector<8xf32>
    %66 = vector.shape_cast %65 : vector<8xf32> to vector<8x1xf32>
    %cst_22 = arith.constant 3.125000e-02 : f32
    %67 = vector.broadcast %cst_22 : f32 to vector<8x1xf32>
    %68 = arith.mulf %66, %67 : vector<8x1xf32>
    %cst_23 = arith.constant 9.99999974E-6 : f32
    %69 = vector.broadcast %cst_23 : f32 to vector<8x1xf32>
    %70 = arith.addf %68, %69 : vector<8x1xf32>
    %71 = math.rsqrt %70 : vector<8x1xf32>
    %72 = vector.broadcast %71 : vector<8x1xf32> to vector<8x128xf32>
    %73 = arith.mulf %63, %72 : vector<8x128xf32>
    %74 = vector.broadcast %47 : vector<1x128xf32> to vector<8x128xf32>
    %75 = arith.mulf %73, %74 : vector<8x128xf32>
    %76 = vector.broadcast %49 : vector<1x128xf32> to vector<8x128xf32>
    %77 = arith.addf %75, %76 : vector<8x128xf32>
    %cst_24 = arith.constant 0.000000e+00 : f32
    %78 = vector.broadcast %cst_24 : f32 to vector<8x128xf32>
    %79 = arith.maximumf %77, %78 : vector<8x128xf32>
    %80 = arith.truncf %79 : vector<8x128xf32> to vector<8x128xbf16>
    %81 = arith.extf %80 : vector<8x128xbf16> to vector<8x128xf32>
    %82 = arith.addf %0, %81 : vector<8x128xf32>
    %c0_25 = arith.constant 0 : index
    %c0_26 = arith.constant 0 : index
    %83 = vector.load %arg4[%c0_25, %c0_26] : memref<8x128xf32, #tpu.memory_space<vmem>>, vector<8x128xf32>
    tpu.vector_store %arg4[%c0_25, %c0_26], %82 {strides = array<i32>} : memref<8x128xf32, #tpu.memory_space<vmem>>, vector<8x128xf32>,
    return
  }
  func.func @transform_0(%arg0: i32) -> (i32, i32) {
    %c0_i32 = arith.constant 0 : i32
    %c0_i32_0 = arith.constant 0 : i32
    return %arg0, %c0_i32 : i32, i32
  }
  func.func @transform_1(%arg0: i32) -> (i32, i32, i32) {
    %c0_i32 = arith.constant 0 : i32
    %c0_i32_0 = arith.constant 0 : i32
    %c0_i32_1 = arith.constant 0 : i32
    %c0_i32_2 = arith.constant 0 : i32
    return %c0_i32, %c0_i32_0, %c0_i32_1 : i32, i32, i32
  }
  func.func @transform_2(%arg0: i32) -> (i32, i32, i32) {
    %c0_i32 = arith.constant 0 : i32
    %c0_i32_0 = arith.constant 0 : i32
    %c0_i32_1 = arith.constant 0 : i32
    %c0_i32_2 = arith.constant 0 : i32
    return %c0_i32, %c0_i32_0, %c0_i32_1 : i32, i32, i32
  }
  func.func @transform_3(%arg0: i32) -> (i32, i32) {
    %c0_i32 = arith.constant 0 : i32
    %c0_i32_0 = arith.constant 0 : i32
    return %arg0, %c0_i32 : i32, i32
  }
}

</mosaic_0001>

<bundles_post_ra>
// kernel: tpu_custom_call.1
= control target key start
LH: loop header
LB: loop body
LE: loop exit
PB: predicated region body
PF: predicated region fallthrough
CT: control target
= control target key end

     0   :  { %8 = vsyncpa [#allocation3], 0  ;;  %s1088_s0 = inlined_call_operand.hbm [shape: f32[16,128], index: 0, kind: input, shape index: {}]   ;;  %s1089_s1 = inlined_call_operand.hbm [shape: bf16[2,128,128], index: 1, kind: input, shape index: {}]   ;;  %s1090_s2 = inlined_call_operand.vmem [shape: f32[2,3,128], index: 2, kind: input, shape index: {}]   ;;  %s1091_s3 = inlined_call_operand.hbm [shape: f32[16,128], index: 3, kind: output, shape index: {}]  }
   0x1   :  { %10 = vsyncpa [#allocation3 + $0x1], 0 }
   0x2   :  { %11 = vsyncpa [#allocation6], 0 }
   0x3   :  { %12 = vsyncpa [#allocation4], 0 }
   0x4   :  { %14 = vsyncpa [#allocation4 + $0x1], 0  ;;  %s891_s12 = smov 0   ;;  %s893_s13 = smov 0  }
   0x5   :  { %s895_s14 = smov 0   ;;  %s897_s15 = smov 0  }
   0x6 LB: > { %s912_s16 = sadd.s32 4294967295, %s862_s15   ;;  %s571_s17 = sadd.s32 4294967294, %s862_s15   ;;  %s862_s15 = sphi %s897_s15, %s1113_s15   ;;  %s858_s14 = sphi %s895_s14, %s1112_s14   ;;  %s854_s13 = sphi %s893_s13, %s1111_s13   ;;  %s850_s12 = sphi %s891_s12, %s1110_s12  }
   0x7   : > { %p40_p0 = scmp.ne.s32.totalorder %s854_s13, %s850_s12  ;;  %p1092_p1 = scmp.eq.s32.totalorder %s912_s16, 0 }
   0x8   : > { %p112_p3 = scmp.eq.s32.totalorder %s571_s17, 1  ;;  %p572_p5 = scmp.ge.s32.totalorder %s862_s15, 1 }
   0x9   : > { %p921_p4 = por %p1092_p1, %p40_p0  ;;  %p119_p7 = scmp.lt.s32.totalorder %s862_s15, 3 }
   0xa   : > { %p926_p6 = por %p112_p3, %p40_p0  ;;  %s864_s21 = smov [#allocation5]  }
   0xb   : > { %s1096_s18 = scalar_select %p921_p4, 1, 0 }
   0xc   : > { %s1097_s19 = scalar_select %p926_p6, 1, 0 }
   0xd   : > { %p931_p8 = pnand %p572_p5, %p119_p7  ;;  %s131_s22 = sshll.u32 %s864_s21, 4  ;;  %s132_s22 = int_to_ptr.vmem [resolvable:$true] %s131_s22 }
   0xe   : > { %s945_s24 = sadd.s32 1, %s862_s15   ;;  %s27_s25 = sadd.s32 1, %s858_s14 }
   0xf   : > { %s1098_s20 = scalar_select %p931_p8, 1, 0 }
  0x10   : > { %p667_p9 = pneg %p931_p8  ;;  %s24_s26 = ssub.s32 %s862_s15, %s945_s24 }
  0x11   : > { %s751_s27 = scalar_lea.vmem %s132_s22, 2048  ;;  %p759_p5 = scmp.lt.s32.totalorder %s132_s22, %s132_s22 }
  0x12   : > { %p940_p11 = pnand %p667_p9, %p1092_p1  ;;  %p752_p13 = scmp.ne.s32.totalorder %s132_s22, %s751_s27 }
  0x13   : > { %p760_p7 = scmp.lt.s32.totalorder %s751_s27, %s751_s27 }
  0x14   : > { %p742_p12 = pneg %p940_p11 }
  0x15   : > { %p761_p10 = por %p760_p7, %p759_p5 }
  0x16   : > { %p754_p0 = pnand %p752_p13, %p742_p12 }
  0x18   : > { %p755_p3 = pneg %p754_p0 }
  0x1a   : > { %p762_p2 = pnand %p761_p10, %p755_p3 }
  0x1c   : > { %765 = shalt.err (!%p762_p2)
}
  0x1d   : > { %s865_s28 = smov 64   ;;  %s866_s29 = smov 4  }
  0x1e   : > { %670 = dma.hbm_to_vmem [thread:$0]  (!%p940_p11), %s1089_s1, 2048, %s132_s22, [#allocation6], %s865_s28, %s865_s28, %s866_s29  }
  0x1f   : > { %p25_p9 = scmp.eq.s32.totalorder %s24_s26, 0  ;;  %p34_p12 = scmp.ne.s32.totalorder %s858_s14, %s854_s13 }
  0x20   : > { %p35_p10 = scmp.eq.s32.totalorder %s862_s15, 0  ;;  %p680_p2 = scmp.lt.s32.totalorder %s862_s15, 2 }
  0x21   : > { %s962_s5 = scalar_select %p25_p9, %s858_s14, %s27_s25  }
  0x22   : > { %p36_p13 = por %p35_p10, %p34_p12  ;;  %p1100_p0 = scmp.eq.s32.totalorder %s912_s16, 1 }
  0x23   : > { %s148_s7 = sand.u32 1, %s858_s14   ;;  %s576_s8 = sshll.u32 %s862_s15, 7 }
  0x24   : > { %p966_p3 = por %p1100_p0, %p34_p12  ;;  %s575_s9 = sshll.u32 %s148_s7, 3 }
  0x25   : > { %s975_s17 = scalar_lea.hbm %s1088_s0, %s576_s8  ;;  %s152_s21 = scalar_lea.vmem [#allocation2], %s575_s9 }
  0x26   : > { %s1101_s6 = scalar_select %p966_p3, 1, 0 }
  0x27   : > { %s159_s22 = sshll.u32 %s152_s21, 4  ;;  %p977_p11 = pnand %p680_p2, %p36_p13  ;;  %s160_s22 = int_to_ptr.vmem [resolvable:$true] %s159_s22 }
  0x28   : > { %s149_s25 = scalar_lea.sflag [#allocation3], %s148_s7  ;;  %s766_s26 = scalar_lea.hbm %s975_s17, 128 }
  0x29   : > { %p767_p5 = scmp.ne.s32.totalorder %s975_s17, %s766_s26  ;;  %p768_p7 = pneg %p977_p11 }
  0x2a   : > { %s771_s29 = scalar_lea.hbm %s1088_s0, 256  ;;  %p772_p10 = scmp.lt.s32.totalorder %s975_s17, %s1088_s0 }
  0x2b   : > { %p769_p9 = pnand %p768_p7, %p767_p5  ;;  %p773_p2 = scmp.lt.s32.totalorder %s771_s29, %s766_s26 }
  0x2d   : > { %p770_p12 = pneg %p769_p9  ;;  %p774_p13 = por %p773_p2, %p772_p10 }
  0x2f   : > { %p775_p0 = pnand %p774_p13, %p770_p12 }
  0x31   : > { %778 = shalt.err (!%p775_p0)
}
  0x32   : > { %s779_s8 = scalar_lea.vmem %s160_s22, 128  ;;  %s867_s7 = smov [#allocation2]  }
  0x33   : > { %p780_p1 = scmp.ne.s32.totalorder %s160_s22, %s779_s8  ;;  %s784_s9 = sshll.u32 %s867_s7, 4  ;;  %s785_s9 = int_to_ptr.vmem [resolvable:$false] %s784_s9 }
  0x34   : > { %s786_s10 = scalar_lea.vmem %s785_s9, 256  ;;  %p787_p5 = scmp.lt.s32.totalorder %s160_s22, %s785_s9 }
  0x35   : > { %p782_p6 = pnand %p780_p1, %p768_p7  ;;  %p788_p9 = scmp.lt.s32.totalorder %s786_s10, %s779_s8 }
  0x37   : > { %p783_p3 = pneg %p782_p6  ;;  %p789_p4 = por %p788_p9, %p787_p5 }
  0x39   : > { %p790_p8 = pnand %p789_p4, %p783_p3 }
  0x3b   : > { %793 = shalt.err (!%p790_p8)
}
  0x3c   : > { %674 = dma.hbm_to_vmem [thread:$0]  (!%p977_p11), %s975_s17, 128, %s160_s22, %s149_s25  }
  0x3d   : > { %p1103_p12 = scmp.ne.s32.totalorder %s1098_s20, 0 }
  0x3e   : > { %s998_s11 = sand.u32 (!%p1103_p12), 1, %s854_s13   ;;  %p1104_p1 = scmp.ne.s32.totalorder (!%p1103_p12), %s1096_s18, 0 }
  0x3f   : > { %168 = sbr.rel (%p1103_p12) target bundleno = 1135 (0x46f), region = 32  ;;  %s578_s21 = sshll.u32 (!%p1103_p12), %s998_s11, 3 }
  0x40   : > { %s171_s26 = scalar_lea.sflag (!%p1103_p12), [#allocation3], %s998_s11  ;;  %s1004_s27 = scalar_lea.vmem (!%p1103_p12), [#allocation2], %s578_s21 }
  0x44   : > { %837 = dma.done.wait (%p1104_p1), %s171_s26, 128  }
  0x45   : > { %839 = vsyncadd (%p1104_p1), %s171_s26, 4294967168  ;;  %p1105_p4 = scmp.eq.s32.totalorder %s912_s16, 0 }
  0x47   : > { %841 = dma.done.wait (%p1105_p4), [#allocation6], 2048   ;;  %p1106_p6 = pmov %p1105_p4 }
  0x48   : > { %v868_v0 = vmov 0.0   ;;  %vm869_vm0 = vmmov 0   ;;  %v720_v1 = vld [vmem:[#allocation5 + $0x38] sm:$0xff]   ;;  %v721_v2 = vld [vmem:[#allocation5 + $0x30] sm:$0xff]   ;;  %v722_v3 = vld [vmem:[#allocation5 + $0x28] sm:$0xff]   ;;  %v222_v11 = vlaneseq  ;;  %s598_s23 = sshll.u32 %s912_s16, 7 }
  0x49   : > { %843 = vsyncadd (%p1106_p6), [#allocation6], 4294965248  ;;  %619 = vmatprep.subr.bf16.mxu0 %v868_v0  ;;  %635 = vmatprep.mubr.msk.bf16.mxu0 %vm869_vm0, %v868_v0  ;;  %v723_v4 = vld [vmem:[#allocation5 + $0x20] sm:$0xff]   ;;  %v724_v5 = vld [vmem:[#allocation5 + $0x18] sm:$0xff]   ;;  %s200_s25 = scalar_lea.vmem [#allocation7], %s578_s21  ;;  %s489_s4 = scalar_lea.hbm %s1091_s3, %s598_s23 }
  0x4a   : > { %639 = vmatprep.subr.bf16.mxu1 %v868_v0  ;;  %655 = vmatprep.mubr.msk.bf16.mxu1 %vm869_vm0, %v868_v0  ;;  %v725_v6 = vld [vmem:[#allocation5 + $0x10] sm:$0xff]   ;;  %v726_v7 = vld [vmem:[#allocation5 + $0x8] sm:$0xff]   ;;  %v727_v8 = vld [vmem:[#allocation5] sm:$0xff]   ;;  %v1030_v12 = vshrl.u32 %v222_v11, 7  ;;  %v319_v22 = vand.u32 127, %v222_v11  ;;  %s491_s28 = sshll.u32 %s200_s25, 4  ;;  %s492_s28 = int_to_ptr.vmem [resolvable:$true] %s491_s28 }
  0x4b   : > { %620 = vmatpush3.bf16.msra.mxu0 %v720_v1  ;;  %v1025_v9 = vld [vmem:[%s1004_s27] sm:$0xff]  ;;  %v730_v29 = vld [vmem:[#allocation5 + $0x68] sm:$0xff]   ;;  %v731_v30 = vld [vmem:[#allocation5 + $0x60] sm:$0xff]   ;;  %s478_s8 = scalar_lea.sflag [#allocation4], %s998_s11  ;;  %s794_s7 = scalar_lea.vmem %s492_s28, 128 }
  0x4c   : > { %621 = vmatprep.subr.bf16.mxu0 %v868_v0  ;;  %v205_v10 = vpack.c.bf16 %v1025_v9, %v1025_v9  ;;  %v224_v13 = vsub.s32 0, %v1030_v12  ;;  %v203_v14 = vld [vmem:[%s1090_s2] sm:$0x7]  ;;  %v728_v21 = vld [vmem:[#allocation5 + $0x78] sm:$0xff]   ;;  %vm320_vm1 = vcmp.lt.s32.totalorder %v319_v22, 32  ;;  %v734_v33 = vld [vmem:[#allocation5 + $0x48] sm:$0xff]   ;;  %p795_p8 = scmp.ne.s32.totalorder %s492_s28, %s794_s7 }
  0x4d   : > { %640 = vmatpush3.bf16.msra.mxu1 %v728_v21  ;;  %v729_v28 = vld [vmem:[#allocation5 + $0x70] sm:$0xff]   ;;  %v732_v31 = vld [vmem:[#allocation5 + $0x58] sm:$0xff]   ;;  %v735_v34 = vld [vmem:[#allocation5 + $0x40] sm:$0xff]   ;;  %v331_v38 = vsub.s32 1, %v1030_v12  ;;  %v336_v39 = vsub.s32 2, %v1030_v12  ;;  %p1107_p3 = scmp.ne.s32.totalorder %s1101_s6, 0 }
  0x4e   : > { %v225_v15 = vrot.slane %v203_v14, %v224_v13  ;;  %641 = vmatprep.subr.bf16.mxu1 %v868_v0  ;;  %v733_v32 = vld [vmem:[#allocation5 + $0x50] sm:$0xff]   ;;  %s870_s9 = smov [#allocation7]  }
  0x4f   : > { %622 = vmatpush3.bf16.msra.mxu0 %v721_v2  ;;  %v332_v40 = vrot.slane %v203_v14, %v331_v38  ;;  %v337_v43 = vrot.slane %v203_v14, %v336_v39  ;;  %v204_v48 = vld [vmem:[%s1090_s2 + $0x4] sm:$0x7]  ;;  %p796_p11 = pnand %p795_p8, %p1107_p3  ;;  %s798_s16 = sshll.u32 %s870_s9, 4  ;;  %s799_s16 = int_to_ptr.vmem [resolvable:$false] %s798_s16 }
  0x50   : > { %623 = vmatprep.subr.bf16.mxu0 %v868_v0  ;;  %v361_v49 = vrot.slane %v204_v48, %v224_v13  ;;  %v465_v63 = vrot.slane %v204_v48, %v331_v38  ;;  %v470_v1 = vrot.slane %v204_v48, %v336_v39  ;;  %s800_s10 = scalar_lea.vmem %s799_s16, 256  ;;  %p801_p10 = scmp.lt.s32.totalorder %s492_s28, %s799_s16 }
  0x51   : > { %642 = vmatpush3.bf16.msra.mxu1 %v729_v28  ;;  %p797_p7 = pneg %p796_p11  ;;  %p802_p2 = scmp.lt.s32.totalorder %s800_s10, %s794_s7 }
  0x52   : > { %643 = vmatprep.subr.bf16.mxu1 %v868_v0 }
  0x53   : > { %624 = vmatpush3.bf16.msra.mxu0 %v722_v3  ;;  %p803_p13 = por %p802_p2, %p801_p10 }
  0x54   : > { %625 = vmatprep.subr.bf16.mxu0 %v868_v0 }
  0x55   : > { %644 = vmatpush3.bf16.msra.mxu1 %v730_v29  ;;  %p804_p0 = pnand %p803_p13, %p797_p7 }
  0x56   : > { %645 = vmatprep.subr.bf16.mxu1 %v868_v0 }
  0x57   : > { %626 = vmatpush3.bf16.msra.mxu0 %v723_v4 }
  0x58   : > { %627 = vmatprep.subr.bf16.mxu0 %v868_v0 }
  0x59   : > { %646 = vmatpush3.bf16.msra.mxu1 %v731_v30 }
  0x5a   : > { %647 = vmatprep.subr.bf16.mxu1 %v868_v0 }
  0x5b   : > { %628 = vmatpush3.bf16.msra.mxu0 %v724_v5 }
  0x5c   : > { %629 = vmatprep.subr.bf16.mxu0 %v868_v0 }
  0x5d   : > { %648 = vmatpush3.bf16.msra.mxu1 %v732_v31 }
  0x5e   : > { %649 = vmatprep.subr.bf16.mxu1 %v868_v0 }
  0x5f   : > { %630 = vmatpush3.bf16.msra.mxu0 %v725_v6 }
  0x60   : > { %631 = vmatprep.subr.bf16.mxu0 %v868_v0 }
  0x61   : > { %650 = vmatpush3.bf16.msra.mxu1 %v733_v32 }
  0x62   : > { %651 = vmatprep.subr.bf16.mxu1 %v868_v0 }
  0x63   : > { %632 = vmatpush3.bf16.msra.mxu0 %v726_v7 }
  0x64   : > { %633 = vmatprep.subr.bf16.mxu0 %v868_v0 }
  0x65   : > { %652 = vmatpush3.bf16.msra.mxu1 %v734_v33 }
  0x66   : > { %653 = vmatprep.subr.bf16.mxu1 %v868_v0 }
  0x67   : > { %634 = vmatpush3.bf16.msra.mxu0 %v727_v8 }
  0x69   : > { %654 = vmatpush3.bf16.msra.mxu1 %v735_v34 }
  0x6a   : > { %636 = vmatmul.mubr.bf16.vlgmr.msra.gmra.mxu0 %v205_v10 }
 0x12a   : > { %v308_v16 = vpop.f32.mrf.mxu0 }
 0x12b   : > { %v309_v17 = vadd.f32 %v308_v16, %v225_v15 }
 0x12c   : > { %v637_v18 = vpop.f32.mrf.mxu0 }
 0x12d   : > { %314 = vadd.xlane.f32.xlu0 %v309_v17 }
 0x12e   : > { %v311_v19 = vpop.f32.mrf.mxu0 }
 0x130   : > { %v638_v20 = vpop.f32.mrf.mxu0 }
 0x1b6   : > { %v315_v23 = vpop.xlane.xlu0 %314 }
 0x1b7   : > { %v316_v24 = vmul.f32 0.03125, %v315_v23 }
 0x1b9   : > { %v317_v25 = vsub.f32 %v309_v17, %v316_v24 }
 0x1bb   : > { %v321_v26 = vsel %vm320_vm1, %v317_v25, 0.0 }
 0x1bc   : > { %v322_v27 = vmul.f32 %v321_v26, %v321_v26 }
 0x1be   : > { %323 = vadd.xlane.f32.xlu0 %v322_v27 }
 0x247   : > { %v324_v35 = vpop.xlane.xlu0 %323 }
 0x248   : > { %v325_v36 = vmul.f32 0.03125, %v324_v35 }
 0x24a   : > { %v326_v37 = vadd.f32 1e-05, %v325_v36 }
 0x24c   : > { %736 = vrsqrt.f32 %v326_v37 }
 0x259   : > { %v737_v41 = vpop.eup %736 }
 0x25a   : > { %v328_v42 = vmul.f32 %v737_v41, %v321_v26 }
 0x25c   : > { %v333_v44 = vmul.f32 %v332_v40, %v328_v42 }
 0x25e   : > { %v338_v45 = vadd.f32 %v337_v43, %v333_v44 }
 0x260   : > { %v339_v46 = vmax.f32 %v338_v45, 0.0 }
 0x262   : > { %v340_v47 = vpack.c.bf16 %v339_v46, %v339_v46 }
 0x264   : > { %656 = vmatmul.mubr.bf16.vlgmr.msra.gmra.mxu1 %v340_v47 }
 0x324   : > { %v444_v50 = vpop.f32.mrf.mxu1 }
 0x325   : > { %v445_v51 = vadd.f32 %v444_v50, %v361_v49 }
 0x326   : > { %v657_v52 = vpop.f32.mrf.mxu1 }
 0x327   : > { %450 = vadd.xlane.f32.xlu1 %v445_v51 }
 0x328   : > { %v447_v53 = vpop.f32.mrf.mxu1 }
 0x32a   : > { %v658_v54 = vpop.f32.mrf.mxu1 }
 0x3b0   : > { %v451_v55 = vpop.xlane.xlu1 %450 }
 0x3b1   : > { %v452_v56 = vmul.f32 0.03125, %v451_v55 }
 0x3b3   : > { %v453_v57 = vsub.f32 %v445_v51, %v452_v56 }
 0x3b5   : > { %v454_v58 = vsel %vm320_vm1, %v453_v57, 0.0 }
 0x3b6   : > { %v455_v59 = vmul.f32 %v454_v58, %v454_v58 }
 0x3b8   : > { %456 = vadd.xlane.f32.xlu1 %v455_v59 }
 0x441   : > { %v457_v60 = vpop.xlane.xlu1 %456 }
 0x442   : > { %v458_v61 = vmul.f32 0.03125, %v457_v60 }
 0x444   : > { %v459_v62 = vadd.f32 1e-05, %v458_v61 }
 0x446   : > { %738 = vrsqrt.f32 %v459_v62 }
 0x453   : > { %v739_v0 = vpop.eup %738 }
 0x454   : > { %v461_v2 = vmul.f32 %v739_v0, %v454_v58 }
 0x456   : > { %v466_v3 = vmul.f32 %v465_v63, %v461_v2 }
 0x458   : > { %v471_v4 = vadd.f32 %v470_v1, %v466_v3 }
 0x45a   : > { %v472_v5 = vmax.f32 %v471_v4, 0.0 }
 0x45c   : > { %v473_v6 = vpack.c.bf16 %v472_v5, %v472_v5 }
 0x45e   : > { %v474_v7 = vunpack.c.l.bf16 %v473_v6 }
 0x460   : > { %v475_v8 = vadd.f32 %v474_v7, %v1025_v9 }
 0x462   : > { %476 = vst [vmem:[%s200_s25] sm:$0xff] %v475_v8 }
 0x463   : > { %807 = shalt.err (!%p804_p0)
}
 0x464   : > { %s808_s21 = scalar_lea.hbm %s489_s4, 128  ;;  %s812_s27 = scalar_lea.hbm %s1091_s3, 256 }
 0x465   : > { %p809_p5 = scmp.ne.s32.totalorder %s489_s4, %s808_s21  ;;  %p813_p1 = scmp.lt.s32.totalorder %s489_s4, %s1091_s3 }
 0x466   : > { %p814_p4 = scmp.lt.s32.totalorder %s812_s27, %s808_s21 }
 0x467   : > { %p810_p9 = pnand %p809_p5, %p1107_p3 }
 0x468   : > { %p815_p6 = por %p814_p4, %p813_p1 }
 0x469   : > { %p811_p12 = pneg %p810_p9 }
 0x46b   : > { %p816_p8 = pnand %p815_p6, %p811_p12 }
 0x46d   : > { %819 = shalt.err (!%p816_p8)
}
 0x46e   : > { %665 = dma.vmem_to_hbm [thread:$0]  (%p1107_p3), %s492_s28, 128, %s489_s4, %s478_s8  }
 0x46f PF: > { %s503_s17 = sand.u32 1, %s850_s12   ;;  %p1108_p11 = scmp.ne.s32.totalorder %s1097_s19, 0 }
 0x470   : > { %p1109_p7 = scmp.ge.s32.totalorder %s862_s15, 2  ;;  %s504_s22 = scalar_lea.sflag [#allocation4], %s503_s17 }
 0x472   : > { %p676_p10 = pnand %p1109_p7, %p1108_p11 }
 0x474   : > { %p677_p2 = pneg %p676_p10 }
 0x476   : > { %845 = dma.done.wait (%p677_p2), %s504_s22, 128  }
 0x477   : > { %847 = vsyncadd (%p677_p2), %s504_s22, 4294967168  ;;  %p17_p13 = scmp.ge.s32.totalorder %s945_s24, 4   ;;  %s1110_s12 = smov %s854_s13 }
 0x478   : > { %s1111_s13 = smov %s858_s14  ;;  %s1112_s14 = smov %s962_s5 }
 0x479   : > { %s1113_s15 = smov %s945_s24  ;;  %19 = sbr.rel (!%p17_p13) target bundleno = 6 (0x6), region = 82 }
 0x47e   :  { %509 = vsyncpa [#allocation3], 1 }
 0x47f   :  { %511 = vsyncpa [#allocation3 + $0x1], 1 }
 0x480   :  { %512 = vsyncpa [#allocation6], 1 }
 0x481   :  { %513 = vsyncpa [#allocation4], 1 }
 0x482   :  { %515 = vsyncpa [#allocation4 + $0x1], 1 }

</bundles_post_ra>
